<compile_context>
chip_gen: v5e
topology: v5e:2x2
jax: 0.10.0
libtpu: 0.0.40
codegen_flags: <defaults>
</compile_context>

<pallas_src>
import functools

import jax
import jax.numpy as jnp
from jax.experimental import pallas as pl
from jax.experimental.pallas import tpu as pltpu


# ----------------------------------------------------------------------------
# Small JAX helpers (parameter setup / glue, not the hot path)
# ----------------------------------------------------------------------------
def rot6d_to_rotmat(x):
    """x: (B, 6) -> (B, 3, 3). Gram-Schmidt, columns convention."""
    x = x.reshape(-1, 3, 2)
    a1, a2 = x[:, :, 0], x[:, :, 1]
    b1 = a1 / jnp.linalg.norm(a1, axis=-1, keepdims=True)
    dot = jnp.sum(b1 * a2, axis=-1, keepdims=True)
    b2u = a2 - dot * b1
    b2 = b2u / jnp.linalg.norm(b2u, axis=-1, keepdims=True)
    b3 = jnp.cross(b1, b2)
    return jnp.stack([b1, b2, b3], axis=-1)


def rot_to_rot6d(R):
    """R: (B, 3, 3) -> (B, 6). Inverse of rot6d_to_rotmat for valid rotations."""
    return R[:, :, :2].reshape(R.shape[0], 6)


def angular_distance(R1, R2):
    tr = jnp.trace(R1.T @ R2)
    # NOTE: clipped to avoid NaN from fp error at trace ~ 3.0 (the PyTorch
    # reference does not clip and can produce NaN there). Diagnostic only.
    angle = jnp.abs(jnp.arccos(jnp.clip((tr - 1.0) / 2.0, -1.0, 1.0))) % (2.0 * jnp.pi)
    return jnp.where(angle > jnp.pi, 2.0 * jnp.pi - angle, angle)


def dewhiten(camvec9d, invP_i, zca):
    if zca:
        return (invP_i @ camvec9d[:, None])[:, 0]
    return camvec9d


# ----------------------------------------------------------------------------
# Pallas kernel: per-ray rotate / translate / point expansion
# ----------------------------------------------------------------------------
def _camcal_kernel(aux_ref, z_ref, pts_ref, dcal_ref, *, z_is_ray_last):
    # aux_ref: (6, 3, TN). Leading-dim indexing is a free view (no sublane
    # shuffles); the tiny [i:i+1] slices below stay inside one (8,128) tile.
    d = aux_ref[0]       # (3, TN)  d[i, n]  = rays_d[n, i]
    o = aux_ref[1]       # (3, TN)  rays_o
    t = aux_ref[2]       # (3, TN)  T
    r0 = aux_ref[3]      # (3, TN)  R[n, 0, :]  -> element [j, n] = R[n, 0, j]
    r1 = aux_ref[4]      # (3, TN)  R[n, 1, :]
    r2 = aux_ref[5]      # (3, TN)  R[n, 2, :]

    # rays_d_cal[j, n] = sum_i d[i, n] * R[n, i, j]   (unrolled VPU mul-add)
    dcal = d[0:1, :] * r0 + d[1:2, :] * r1 + d[2:3, :] * r2   # (3, TN)
    ocal = o + t                                              # (3, TN)
    dcal_ref[...] = dcal

    if z_is_ray_last:
        zt = z_ref[...]          # (S, TN), already lane-dense
    else:
        zt = z_ref[...].T        # (TN, S) -> (S, TN); XLU, only when S >= 128

    # pts[j, s, n] = dcal[j, n] * z[s, n] + ocal[j, n]; f32 math, cast at store
    pts = dcal[:, None, :] * zt[None, :, :] + ocal[:, None, :]
    pts_ref[...] = pts.astype(pts_ref.dtype)


# ----------------------------------------------------------------------------
# Tile sizing / VMEM budgeting
# ----------------------------------------------------------------------------
def _tpu_generation():
    """Best-effort TPU generation sniff (7 -> v7x, 6 -> v6e, 5 -> v5e/v5p)."""
    try:
        kind = jax.devices()[0].device_kind.lower()
    except Exception:
        return None
    if "tpu" not in kind:
        return None
    for g in (7, 6, 5, 4):
        if str(g) in kind:
            return g
    return None


def _round_up(x, m):
    return ((x + m - 1) // m) * m


def _per_ray_vmem_bytes(n_samples, z_is_ray_last, pts_itemsize):
    """VMEM bytes per ray (lane) for ONE buffer set of {aux, z, pts, dcal}."""
    s = max(int(n_samples), 1)
    s8 = _round_up(s, 8)
    aux = 6 * 8 * 4                                       # (6, 3->8, tn) f32
    z = s8 * 4 if z_is_ray_last else _round_up(s, 128) * 4
    pts = 3 * s8 * pts_itemsize
    dcal = 8 * 4
    return aux + z + pts + dcal


def _pick_tn(n_rays, n_samples, *, z_is_ray_last, pts_itemsize, gen):
    """Lane tile (multiple of 128, capped at 1024) sized for a per-generation
    double-buffered VMEM budget.  Only v7x (2 TensorCores) gets the '>=2 grid
    steps' split; on single-TC v5e/v6e halving the tile is pure per-step
    overhead (~0.35 us/step) with no occupancy benefit."""
    if gen is not None and gen >= 7:
        budget = 20 << 20      # stay well under 64 MiB physical / 32 MiB scoped
    elif gen == 6:
        budget = 48 << 20      # single TC, 128 MiB VMEM: big tiles
    elif gen == 5:
        budget = 40 << 20      # explicit vmem_limit_bytes lifts the 16 MiB default
    else:
        budget = 12 << 20      # unknown chip: fit every default scoped limit
    per_ray2 = 2 * _per_ray_vmem_bytes(n_samples, z_is_ray_last, pts_itemsize)
    cap = max(128, (budget // per_ray2) // 128 * 128)
    tn = min(1024, cap)        # >1024 lanes buys nothing (HBM roofline plateau)
    if gen is not None and gen >= 7 and n_rays > 128:
        # keep >=2 grid steps so both v7x TensorCores shard the parallel axis
        tn = min(tn, max(128, _round_up((n_rays + 1) // 2, 128)))
    tn = min(tn, _round_up(n_rays, 128))   # never wider than the padded ray count
    return max(128, int(tn))


# ----------------------------------------------------------------------------
# pallas_call wrapper
# ----------------------------------------------------------------------------
def _camcal_pallas(aux, z, *, z_is_ray_last, pts_dtype=jnp.float32, tn=None):
    """aux: (6, 3, N) packed ray-last inputs.
    z: (S, N) if z_is_ray_last else native (N, S).
    Returns pts (3, S, Np) in pts_dtype, rays_d_cal (3, Np) f32, and Np."""
    N = aux.shape[2]
    S = z.shape[0] if z_is_ray_last else z.shape[1]
    gen = _tpu_generation()
    itemsize = jnp.dtype(pts_dtype).itemsize
    if tn is None:
        tn = _pick_tn(N, S, z_is_ray_last=z_is_ray_last,
                      pts_itemsize=itemsize, gen=gen)
    Np = pl.cdiv(N, tn) * tn
    if Np != N:                                  # zero-pad ray axis; sliced off later
        aux = jnp.pad(aux, ((0, 0), (0, 0), (0, Np - N)))
        z = jnp.pad(z, ((0, 0), (0, Np - N)) if z_is_ray_last
                    else ((0, Np - N), (0, 0)))
    grid = (Np // tn,)

    # Explicit scoped-VMEM limit derived from the same footprint formula
    # (double-buffered) + headroom for compiler-internal scratch/semaphores:
    # deterministic across the 16/32 MiB per-generation scoped defaults.
    footprint = 2 * tn * _per_ray_vmem_bytes(S, z_is_ray_last, itemsize)
    vmem_cap = (48 << 20) if (gen is not None and gen >= 7) else (100 << 20)
    vmem_limit = int(min(vmem_cap, max(16 << 20, footprint + (12 << 20))))

    flops = int(Np) * (18 + 6 * int(S))
    bytes_accessed = int(4 * (18 * Np + Np * S + 3 * Np) + itemsize * 3 * S * Np)

    if z_is_ray_last:
        z_spec = pl.BlockSpec((S, tn), lambda n: (0, n))       # lane-dense small-S
    else:
        z_spec = pl.BlockSpec((tn, S), lambda n: (n, 0))       # native large-S

    kernel = functools.partial(_camcal_kernel, z_is_ray_last=z_is_ray_last)
    pts_T, dcal_T = pl.pallas_call(
        kernel,
        out_shape=(
            jax.ShapeDtypeStruct((3, S, Np), pts_dtype),
            jax.ShapeDtypeStruct((3, Np), jnp.float32),
        ),
        grid=grid,
        in_specs=[
            pl.BlockSpec((6, 3, tn), lambda n: (0, 0, n)),     # packed aux (6,3,N)
            z_spec,                                            # z_vals
        ],
        out_specs=(
            # TODO(synk): pipeline_mode=pl.Buffered(3) here only if xprof shows
            # exposed pts writeback (costs VMEM, scarce on v7x).
            pl.BlockSpec((3, S, tn), lambda n: (0, 0, n)),     # pts   (3, S, N)
            pl.BlockSpec((3, tn), lambda n: (0, n)),           # d_cal (3, N)
        ),
        compiler_params=pltpu.CompilerParams(
            dimension_semantics=("parallel",),
            vmem_limit_bytes=vmem_limit),
        cost_estimate=pl.CostEstimate(flops=flops, transcendentals=0,
                                      bytes_accessed=bytes_accessed),
    )(aux, z)
    return pts_T, dcal_T, Np


# ----------------------------------------------------------------------------
# Full forward (mirrors CamCal.forward)
# ----------------------------------------------------------------------------
def camcal_forward(op_camvec, invP, batch, z_vals, *, identity_cam=0, zca=False,
                   use_pallas=True, pts_layout="ray_last",
                   pts_dtype=jnp.float32, tn=None):
    """CamCal.forward.

    pts_layout:
      "ray_last" (default, fastest): batch['pts'] is (3, S, N) — identical
          values to the module, ZERO post-kernel relayout; consumers index
          pts[j, s, n] or fuse their own relayout.
      "nsd": exact module layout (N, S, 3); adds one XLA transpose over the
          pts array (~1.5x the kernel's HBM traffic) — use only if required.
    """
    rays_o = batch["rays_o"]
    rays_d = batch["rays_d"]
    N, S = z_vals.shape

    if "real_cam_idx" not in batch:
        cam_idxs = jnp.zeros((N,), jnp.int32) + identity_cam
    else:
        cam_idxs = batch["real_cam_idx"].astype(jnp.int32)

    # per-camera dewhiten -> Rvec / T  (n_cams == 3, tiny)
    camvecs = jnp.stack(
        [dewhiten(op_camvec[i], invP[i], zca) for i in range(op_camvec.shape[0])], 0
    )
    Rvec = camvecs[:, :6]          # (n_cams, 6)
    Tcam = camvecs[:, 6:]          # (n_cams, 3)
    Rmats = rot6d_to_rotmat(Rvec)  # (n_cams, 3, 3)

    mask = (cam_idxs == identity_cam).astype(jnp.float32)
    eye = jnp.eye(3, dtype=jnp.float32)
    R_per = Rmats[cam_idxs] * (1.0 - mask)[:, None, None] + eye[None] * mask[:, None, None]
    T_per = Tcam[cam_idxs] * (1.0 - mask)[:, None]          # identity T is zeros

    if use_pallas:
        # Pack per-ray inputs into ONE ray-last (6, 3, N) array with the fields
        # on the LEADING dim so the kernel indexes them as free views.
        aux = jnp.stack(
            [rays_d.T, rays_o.T, T_per.T,
             R_per[:, 0, :].T, R_per[:, 1, :].T, R_per[:, 2, :].T],
            axis=0).astype(jnp.float32)                      # (6, 3, N)
        z32 = z_vals.astype(jnp.float32)
        z_is_ray_last = S < 128     # small S: wrapper transpose (negligible
                                    # traffic), avoids 128-lane padding of z
        z_in = z32.T if z_is_ray_last else z32
        pts_T, dcal_T, _ = _camcal_pallas(aux, z_in, z_is_ray_last=z_is_ray_last,
                                          pts_dtype=pts_dtype, tn=tn)
        rays_d_cal = dcal_T[:, :N].T                         # (N, 3), tiny
        if pts_layout == "ray_last":
            pts = pts_T[:, :, :N]                            # (3, S, N), no relayout
        elif pts_layout == "nsd":
            # exact module layout; this relayout re-reads + re-writes the whole
            # pts array in HBM — prefer the ray-last default when possible.
            pts = jnp.transpose(pts_T[:, :, :N], (2, 1, 0))  # (N, S, 3)
        else:
            raise ValueError(f"unknown pts_layout: {pts_layout!r}")
    else:
        # pure-JAX reference of the same math
        rays_d_cal = jnp.einsum("ni,nij->nj", rays_d, R_per,
                                precision=jax.lax.Precision.HIGHEST)
        rays_o_cal = rays_o + T_per
        pts_nsd = rays_d_cal[:, None, :] * z_vals[..., None] + rays_o_cal[:, None, :]
        pts = pts_nsd if pts_layout == "nsd" else jnp.transpose(pts_nsd, (2, 1, 0))

    # diagnostics (stored as buffers in the torch module); uses the first three
    # per-ray matrices/translations, exactly like the reference.
    Rerr = (angular_distance(eye, R_per[0])
            + angular_distance(eye, R_per[1])
            + angular_distance(eye, R_per[2]))
    Terr = (jnp.linalg.norm(T_per[0])
            + jnp.linalg.norm(T_per[1])
            + jnp.linalg.norm(T_per[2]))

    out = dict(batch)
    out.update(pts=pts, rays_d=rays_d_cal)
    return out, Rerr, Terr


# ----------------------------------------------------------------------------
# Demo / self-test
# ----------------------------------------------------------------------------
if __name__ == "__main__":
    key = jax.random.PRNGKey(0)
    k1, k2, k3, k4, k5 = jax.random.split(key, 5)

    n_cams, identity_cam, error, zca = 3, 0, 0.005, False
    # N deliberately NOT a multiple of 128 to exercise the cdiv/pad path.
    N, S = 250, 8   # rays, samples per ray

    # --- deterministic parameter init (mirrors CamCal.__init__, synthetic noise) ---
    R_id = jnp.eye(3, dtype=jnp.float32)[None]
    Rvec0 = jnp.broadcast_to(rot_to_rot6d(R_id), (n_cams, 6))
    T0 = jnp.zeros((n_cams, 3), jnp.float32)
    noiseRvec = Rvec0 + error * jax.random.normal(k1, Rvec0.shape, jnp.float32)
    noiseT = T0 + error * jax.random.normal(k2, T0.shape, jnp.float32)
    # whiten is identity for zca=False
    op_camvec = jnp.concatenate([noiseRvec, noiseT], axis=-1)          # (3, 9) parameter
    P = jnp.broadcast_to(jnp.eye(9, dtype=jnp.float32)[None], (n_cams, 9, 9))
    invP = P                                                            # buffers

    # --- inputs ---
    rays_o = jax.random.normal(k3, (N, 3), jnp.float32)
    rays_d = jax.random.normal(k4, (N, 3), jnp.float32)
    rays_d = rays_d / jnp.linalg.norm(rays_d, axis=-1, keepdims=True)
    z_vals = jnp.sort(jax.random.uniform(k5, (N, S), jnp.float32, 0.1, 4.0), axis=-1)
    real_cam_idx = (jnp.arange(N) % n_cams).astype(jnp.int32)
    batch = {"rays_o": rays_o, "rays_d": rays_d, "real_cam_idx": real_cam_idx}

    fwd = functools.partial(camcal_forward, identity_cam=identity_cam, zca=zca)

    # pure-JAX reference in the module's (N, S, 3) layout
    out_ref, Rerr_ref, Terr_ref = fwd(op_camvec, invP, batch, z_vals,
                                      use_pallas=False, pts_layout="nsd")
    pts_ref = out_ref["pts"]

    # 1) default fast path: ray-last pts (3, S, N), zero post-kernel relayout
    out_rl, Rerr, Terr = fwd(op_camvec, invP, batch, z_vals, use_pallas=True)
    pts_rl = jax.block_until_ready(out_rl["pts"])
    rays_d_cal = jax.block_until_ready(out_rl["rays_d"])
    assert pts_rl.shape == (3, S, N) and rays_d_cal.shape == (N, 3)
    assert jnp.allclose(jnp.transpose(pts_rl, (2, 1, 0)), pts_ref, atol=1e-5, rtol=1e-5)
    assert jnp.allclose(rays_d_cal, out_ref["rays_d"], atol=1e-5, rtol=1e-5)
    assert jnp.allclose(Rerr, Rerr_ref) and jnp.allclose(Terr, Terr_ref)

    # 2) exact module semantics on request: pts (N, S, 3)
    out_nsd, _, _ = fwd(op_camvec, invP, batch, z_vals, use_pallas=True,
                        pts_layout="nsd")
    pts_nsd = jax.block_until_ready(out_nsd["pts"])
    assert pts_nsd.shape == (N, S, 3)
    assert jnp.allclose(pts_nsd, pts_ref, atol=1e-5, rtol=1e-5)

    # 3) bf16 pts store (halves the dominant HBM write stream; f32 math in VMEM)
    out_bf, _, _ = fwd(op_camvec, invP, batch, z_vals, use_pallas=True,
                       pts_dtype=jnp.bfloat16)
    pts_bf = jax.block_until_ready(out_bf["pts"])
    assert pts_bf.dtype == jnp.bfloat16
    assert jnp.allclose(jnp.transpose(pts_bf.astype(jnp.float32), (2, 1, 0)),
                        pts_ref, atol=5e-2, rtol=2e-2)

    print("KERNEL_OK")
</pallas_src>

<mosaic_0001>
module attributes {stable_mosaic.version = 11 : i64} {
  func.func @_camcal_kernel(%arg0: i32, %arg1: memref<6x3x256xf32, #tpu.memory_space<vmem>>, %arg2: memref<8x256xf32, #tpu.memory_space<vmem>>, %arg3: memref<3x8x256xf32, #tpu.memory_space<vmem>>, %arg4: memref<3x256xf32, #tpu.memory_space<vmem>>) attributes {dimension_semantics = [#tpu.dimension_semantics<parallel>], iteration_bounds = array<i64: 1>, scalar_prefetch = 0 : i64, scratch_operands = 0 : i64, tpu.core_type = #tpu.core_type<tc>, window_params = [{transform_indices = @transform_0, window_bounds = array<i64: 6, 3, 256>}, {transform_indices = @transform_1, window_bounds = array<i64: 8, 256>}, {transform_indices = @transform_2, window_bounds = array<i64: 3, 8, 256>}, {transform_indices = @transform_3, window_bounds = array<i64: 3, 256>}]} {
    %c0 = arith.constant 0 : index
    %c0_0 = arith.constant 0 : index
    %c0_1 = arith.constant 0 : index
    %0 = vector.load %arg1[%c0, %c0_0, %c0_1] : memref<6x3x256xf32, #tpu.memory_space<vmem>>, vector<1x3x256xf32>
    %1 = vector.shape_cast %0 : vector<1x3x256xf32> to vector<3x256xf32>
    %c1 = arith.constant 1 : index
    %c0_2 = arith.constant 0 : index
    %c0_3 = arith.constant 0 : index
    %2 = vector.load %arg1[%c1, %c0_2, %c0_3] : memref<6x3x256xf32, #tpu.memory_space<vmem>>, vector<1x3x256xf32>
    %3 = vector.shape_cast %2 : vector<1x3x256xf32> to vector<3x256xf32>
    %c2 = arith.constant 2 : index
    %c0_4 = arith.constant 0 : index
    %c0_5 = arith.constant 0 : index
    %4 = vector.load %arg1[%c2, %c0_4, %c0_5] : memref<6x3x256xf32, #tpu.memory_space<vmem>>, vector<1x3x256xf32>
    %5 = vector.shape_cast %4 : vector<1x3x256xf32> to vector<3x256xf32>
    %c3 = arith.constant 3 : index
    %c0_6 = arith.constant 0 : index
    %c0_7 = arith.constant 0 : index
    %6 = vector.load %arg1[%c3, %c0_6, %c0_7] : memref<6x3x256xf32, #tpu.memory_space<vmem>>, vector<1x3x256xf32>
    %7 = vector.shape_cast %6 : vector<1x3x256xf32> to vector<3x256xf32>
    %c4 = arith.constant 4 : index
    %c0_8 = arith.constant 0 : index
    %c0_9 = arith.constant 0 : index
    %8 = vector.load %arg1[%c4, %c0_8, %c0_9] : memref<6x3x256xf32, #tpu.memory_space<vmem>>, vector<1x3x256xf32>
    %9 = vector.shape_cast %8 : vector<1x3x256xf32> to vector<3x256xf32>
    %c5 = arith.constant 5 : index
    %c0_10 = arith.constant 0 : index
    %c0_11 = arith.constant 0 : index
    %10 = vector.load %arg1[%c5, %c0_10, %c0_11] : memref<6x3x256xf32, #tpu.memory_space<vmem>>, vector<1x3x256xf32>
    %11 = vector.shape_cast %10 : vector<1x3x256xf32> to vector<3x256xf32>
    %12 = vector.extract_strided_slice %1 {offsets = [0, 0], sizes = [1, 256], strides = [1, 1]} : vector<3x256xf32> to vector<1x256xf32>
    %13 = vector.broadcast %12 : vector<1x256xf32> to vector<3x256xf32>
    %14 = arith.mulf %13, %7 : vector<3x256xf32>
    %15 = vector.extract_strided_slice %1 {offsets = [1, 0], sizes = [1, 256], strides = [1, 1]} : vector<3x256xf32> to vector<1x256xf32>
    %16 = vector.broadcast %15 : vector<1x256xf32> to vector<3x256xf32>
    %17 = arith.mulf %16, %9 : vector<3x256xf32>
    %18 = arith.addf %14, %17 : vector<3x256xf32>
    %19 = vector.extract_strided_slice %1 {offsets = [2, 0], sizes = [1, 256], strides = [1, 1]} : vector<3x256xf32> to vector<1x256xf32>
    %20 = vector.broadcast %19 : vector<1x256xf32> to vector<3x256xf32>
    %21 = arith.mulf %20, %11 : vector<3x256xf32>
    %22 = arith.addf %18, %21 : vector<3x256xf32>
    %23 = arith.addf %3, %5 : vector<3x256xf32>
    %c0_12 = arith.constant 0 : index
    %c0_13 = arith.constant 0 : index
    %24 = vector.load %arg4[%c0_12, %c0_13] : memref<3x256xf32, #tpu.memory_space<vmem>>, vector<3x256xf32>
    tpu.vector_store %arg4[%c0_12, %c0_13], %22 {strides = array<i32>} : memref<3x256xf32, #tpu.memory_space<vmem>>, vector<3x256xf32>,
    %c0_14 = arith.constant 0 : index
    %c0_15 = arith.constant 0 : index
    %25 = vector.load %arg2[%c0_14, %c0_15] : memref<8x256xf32, #tpu.memory_space<vmem>>, vector<8x256xf32>
    %26 = vector.shape_cast %22 : vector<3x256xf32> to vector<3x1x256xf32>
    %27 = vector.shape_cast %25 : vector<8x256xf32> to vector<1x8x256xf32>
    %28 = vector.broadcast %26 : vector<3x1x256xf32> to vector<3x8x256xf32>
    %29 = vector.broadcast %27 : vector<1x8x256xf32> to vector<3x8x256xf32>
    %30 = arith.mulf %28, %29 : vector<3x8x256xf32>
    %31 = vector.shape_cast %23 : vector<3x256xf32> to vector<3x1x256xf32>
    %32 = vector.broadcast %31 : vector<3x1x256xf32> to vector<3x8x256xf32>
    %33 = arith.addf %30, %32 : vector<3x8x256xf32>
    %c0_16 = arith.constant 0 : index
    %c0_17 = arith.constant 0 : index
    %c0_18 = arith.constant 0 : index
    %34 = vector.load %arg3[%c0_16, %c0_17, %c0_18] : memref<3x8x256xf32, #tpu.memory_space<vmem>>, vector<3x8x256xf32>
    tpu.vector_store %arg3[%c0_16, %c0_17, %c0_18], %33 {strides = array<i32>} : memref<3x8x256xf32, #tpu.memory_space<vmem>>, vector<3x8x256xf32>,
    return
  }
  func.func @transform_0(%arg0: i32) -> (i32, i32, i32) {
    %c0_i32 = arith.constant 0 : i32
    %c0_i32_0 = arith.constant 0 : i32
    %c0_i32_1 = arith.constant 0 : i32
    return %c0_i32, %c0_i32_0, %arg0 : i32, i32, i32
  }
  func.func @transform_1(%arg0: i32) -> (i32, i32) {
    %c0_i32 = arith.constant 0 : i32
    %c0_i32_0 = arith.constant 0 : i32
    return %c0_i32, %arg0 : i32, i32
  }
  func.func @transform_2(%arg0: i32) -> (i32, i32, i32) {
    %c0_i32 = arith.constant 0 : i32
    %c0_i32_0 = arith.constant 0 : i32
    %c0_i32_1 = arith.constant 0 : i32
    return %c0_i32, %c0_i32_0, %arg0 : i32, i32, i32
  }
  func.func @transform_3(%arg0: i32) -> (i32, i32) {
    %c0_i32 = arith.constant 0 : i32
    %c0_i32_0 = arith.constant 0 : i32
    return %c0_i32, %arg0 : i32, i32
  }
}

</mosaic_0001>

<bundles_post_ra>
// kernel: tpu_custom_call.1
= control target key start
LH: loop header
LB: loop body
LE: loop exit
PB: predicated region body
PF: predicated region fallthrough
CT: control target
= control target key end

     0   :  { %9 = vsyncpa [#allocation3], 0  ;;  %s365_s0 = inlined_call_operand.hbm [shape: f32[6,3,256], index: 0, kind: input, shape index: {}]   ;;  %s366_s1 = inlined_call_operand.hbm [shape: f32[8,256], index: 1, kind: input, shape index: {}]   ;;  %s367_s2 = inlined_call_operand.hbm [shape: f32[3,8,256], index: 2, kind: output, shape index: {0}]   ;;  %s368_s3 = inlined_call_operand.hbm [shape: f32[3,256], index: 3, kind: output, shape index: {1}]  }
   0x1   :  { %10 = vsyncpa [#allocation6], 0 }
   0x2   :  { %11 = vsyncpa [#allocation4], 0 }
   0x3   :  { %12 = vsyncpa [#allocation9], 0  ;;  %s17_s14 = sshll.u32 %s365_s0, 4  ;;  %s319_s15 = smov [#allocation2]   ;;  %s18_s14 = int_to_ptr.hbm [resolvable:$true] %s17_s14 }
   0x4   :  { %s19_s16 = sshll.u32 %s319_s15, 4  ;;  %s31_s19 = sshll.u32 %s366_s1, 4  ;;  %s20_s16 = int_to_ptr.vmem [resolvable:$true] %s19_s16  ;;  %s32_s19 = int_to_ptr.hbm [resolvable:$true] %s31_s19 }
   0x5   :  { %s320_s20 = smov 128   ;;  %s321_s21 = smov 8  }
   0x6   :  { %25 = dma.hbm_to_vmem [thread:$0]  %s18_s14, 768, %s20_s16, [#allocation3], %s320_s20, %s320_s20, %s321_s21  }
   0x7   :  { %s322_s22 = smov [#allocation5]  }
   0x8   :  { %s33_s23 = sshll.u32 %s322_s22, 4  ;;  %s34_s23 = int_to_ptr.vmem [resolvable:$true] %s33_s23 }
   0x9   :  { %36 = dma.hbm_to_vmem [thread:$0]  %s32_s19, 256, %s34_s23, [#allocation6]  }
   0xa   :  { %311 = dma.done.wait [#allocation3], 768  }
   0xb   :  { %312 = vsyncadd [#allocation3], 4294966528 }
   0xc   :  { %313 = dma.done.wait [#allocation6], 256  }
   0xd   :  { %314 = vsyncadd [#allocation6], 4294967040  ;;  %v51_v0 = vld [vmem:[#allocation2 + $0x18] sm:$0x77]  ;;  %v53_v1 = vld [vmem:[#allocation2 + $0x20] sm:$0x77] }
   0xe   :  { %64 = vst [vmem:[#allocation1] ss:$2 sm:$0xff] %v51_v0  ;;  %v45_v4 = vld [vmem:[#allocation2] sm:$0x77]  ;;  %v55_v6 = vld [vmem:[#allocation2 + $0x28] sm:$0x77] }
   0xf   :  { %v72_v5 = vperm.slane %v45_v4, 5  ;;  %v58_v7 = vperm.slane %v45_v4, 4  ;;  %v71_v8 = vperm.slane %v45_v4, 1  ;;  %v47_v9 = vld [vmem:[#allocation2 + $0x8] sm:$0x77]  ;;  %v57_v13 = vperm.slane %v45_v4, 0 }
  0x10   :  { %v49_v10 = vld [vmem:[#allocation2 + $0x10] sm:$0x77]  ;;  %v87_v15 = vperm.slane %v45_v4, 2  ;;  %v88_v16 = vperm.slane %v45_v4, 6  ;;  %vm116_vm0 = vcmask 1041409   ;;  %vm114_vm1 = vcmask 1040384  }
  0x11   :  { %v76_v14 = vperm.slane %v72_v5, 1  ;;  %v103_v17 = vadd.f32 %v49_v10, %v47_v9  ;;  %v62_v18 = vperm.slane %v58_v7, 0  ;;  %v75_v19 = vperm.slane %v71_v8, 1  ;;  %s323_s0 = smov [#allocation8]   ;;  %s191_s26 = sshll.u32 %s368_s3, 4  ;;  %v111_v46 = vld [vmem:[#allocation5] sm:$0xff]  ;;  %s192_s26 = int_to_ptr.hbm [resolvable:$true] %s191_s26 }
  0x12   :  { %v61_v20 = vperm.slane %v57_v13, 0  ;;  %v91_v22 = vperm.slane %v87_v15, 2  ;;  %v92_v23 = vperm.slane %v88_v16, 2  ;;  %vm119_vm2 = vcmask 1042434   ;;  %s189_s1 = sshll.u32 %s323_s0, 4  ;;  %v112_v48 = vld [vmem:[#allocation5 + $0x8] sm:$0xff]  ;;  %s190_s1 = int_to_ptr.vmem [resolvable:$true] %s189_s1 }
  0x13   :  { %v141_v24 = vrot.slane %v103_v17, 3  ;;  %vm107_vm3 = vcmask 1043456   ;;  %s324_s3 = smov [#allocation7]   ;;  %s177_s30 = sshll.u32 %s367_s2, 4  ;;  %s178_s30 = int_to_ptr.hbm [resolvable:$true] %s177_s30 }
  0x14   :  { %s175_s27 = sshll.u32 %s324_s3, 4  ;;  %s325_s4 = smov 256   ;;  %s176_s27 = int_to_ptr.vmem [resolvable:$true] %s175_s27 }
  0x15   :  { %v65_v2 = vld.sshfl [vmem:[#allocation1] sm:$0xff pattern:$0x75316420]  ;;  %v66_v3 = vld.sshfl [vmem:[#allocation1 + $0x8] sm:$0xff pattern:$0x75316420]  ;;  %v143_v33 = vsel %vm116_vm0, %v103_v17, %v141_v24  ;;  %v142_v36 = vsel %vm114_vm1, %v103_v17, %v141_v24  ;;  %v145_v37 = vsel %vm119_vm2, %v103_v17, %v141_v24 }
  0x16   :  { %78 = vst [vmem:[#allocation1] ss:$2 sm:$0xff] %v53_v1  ;;  %v70_v25 = vmul.f32 %v66_v3, %v62_v18  ;;  %v69_v29 = vmul.f32 %v65_v2, %v61_v20  ;;  %v144_v41 = vrot.slane %v143_v33, 1  ;;  %v147_v42 = vperm.slane %v142_v36, 0  ;;  %s326_s5 = smov 16  }
  0x17   :  { %v148_v43 = vperm.slane %v142_v36, 1  ;;  %v146_v44 = vrot.slane %v145_v37, 2 }
  0x18   :  { %v149_v55 = vperm.slane %v144_v41, 0  ;;  %v150_v56 = vperm.slane %v144_v41, 1 }
  0x19   :  { %v151_v62 = vperm.slane %v146_v44, 0  ;;  %v152_v0 = vperm.slane %v146_v44, 1 }
  0x1d   :  { %v79_v11 = vld.sshfl [vmem:[#allocation1] sm:$0xff pattern:$0x75316420]  ;;  %v80_v12 = vld.sshfl [vmem:[#allocation1 + $0x8] sm:$0xff pattern:$0x75316420] }
  0x1e   :  { %94 = vst [vmem:[#allocation1] ss:$2 sm:$0xff] %v55_v6  ;;  %v84_v21 = vmul.f32 %v80_v12, %v76_v14  ;;  %v83_v26 = vmul.f32 %v79_v11, %v75_v19 }
  0x20   :  { %v86_v30 = vadd.f32 %v84_v21, %v70_v25  ;;  %v85_v34 = vadd.f32 %v83_v26, %v69_v29 }
  0x25   :  { %v95_v27 = vld.sshfl [vmem:[#allocation1] sm:$0xff pattern:$0x75316420]  ;;  %v96_v28 = vld.sshfl [vmem:[#allocation1 + $0x8] sm:$0xff pattern:$0x75316420] }
  0x26   :  { %v99_v31 = vmul.f32 %v95_v27, %v91_v22  ;;  %v100_v32 = vmul.f32 %v96_v28, %v92_v23 }
  0x28   :  { %v102_v35 = vadd.f32 %v100_v32, %v86_v30  ;;  %v101_v38 = vadd.f32 %v99_v31, %v85_v34 }
  0x2a   :  { %v106_v39 = vrot.slane %v102_v35, 4  ;;  %v113_v40 = vrot.slane %v102_v35, 7 }
  0x2c   :  { %v108_v45 = vsel %vm107_vm3, %v101_v38, %v106_v39  ;;  %v115_v47 = vsel %vm114_vm1, %v101_v38, %v113_v40  ;;  %v117_v49 = vsel %vm116_vm0, %v101_v38, %v113_v40  ;;  %v120_v50 = vsel %vm119_vm2, %v101_v38, %v113_v40 }
  0x2d   :  { %110 = vst [vmem:[#allocation8] sm:$0x77] %v108_v45  ;;  %v122_v51 = vperm.slane %v115_v47, 0  ;;  %v123_v52 = vperm.slane %v115_v47, 1  ;;  %v118_v53 = vrot.slane %v117_v49, 1  ;;  %v121_v54 = vrot.slane %v120_v50, 2 }
  0x2e   :  { %194 = dma.vmem_to_hbm [thread:$0]  %s190_s1, 128, %s192_s26, [#allocation9]  }
  0x2f   :  { %v134_v57 = vmul.f32 %v122_v51, %v111_v46  ;;  %v135_v58 = vmul.f32 %v123_v52, %v112_v48  ;;  %v124_v59 = vperm.slane %v118_v53, 0  ;;  %v125_v60 = vperm.slane %v118_v53, 1 }
  0x30   :  { %v126_v61 = vperm.slane %v121_v54, 0  ;;  %v127_v63 = vperm.slane %v121_v54, 1 }
  0x31   :  { %v159_v1 = vadd.f32 %v147_v42, %v134_v57  ;;  %v160_v2 = vadd.f32 %v148_v43, %v135_v58  ;;  %v136_v3 = vmul.f32 %v124_v59, %v111_v46  ;;  %v137_v4 = vmul.f32 %v125_v60, %v112_v48 }
  0x32   :  { %v138_v5 = vmul.f32 %v126_v61, %v111_v46  ;;  %v139_v6 = vmul.f32 %v127_v63, %v112_v48 }
  0x33   :  { %165 = vst [vmem:[#allocation7] sm:$0xff] %v159_v1  ;;  %v161_v7 = vadd.f32 %v149_v55, %v136_v3  ;;  %v162_v8 = vadd.f32 %v150_v56, %v137_v4 }
  0x34   :  { %166 = vst [vmem:[#allocation7 + $0x8] sm:$0xff] %v160_v2  ;;  %v163_v9 = vadd.f32 %v151_v62, %v138_v5  ;;  %v164_v10 = vadd.f32 %v152_v0, %v139_v6 }
  0x35   :  { %167 = vst [vmem:[#allocation7 + $0x10] sm:$0xff] %v161_v7 }
  0x36   :  { %168 = vst [vmem:[#allocation7 + $0x18] sm:$0xff] %v162_v8 }
  0x37   :  { %169 = vst [vmem:[#allocation7 + $0x20] sm:$0xff] %v163_v9 }
  0x38   :  { %170 = vst [vmem:[#allocation7 + $0x28] sm:$0xff] %v164_v10 }
  0x39   :  { %183 = dma.vmem_to_hbm [thread:$0]  %s176_s27, 768, %s178_s30, [#allocation4], %s325_s4, %s325_s4, %s326_s5  }
  0x3a   :  { %315 = dma.done.wait [#allocation4], 768  }
  0x3b   :  { %316 = vsyncadd [#allocation4], 4294966528 }
  0x3c   :  { %317 = dma.done.wait [#allocation9], 128  }
  0x3d   :  { %318 = vsyncadd [#allocation9], 4294967168 }
  0x3e   :  { %203 = vsyncpa [#allocation3], 1 }
  0x3f   :  { %204 = vsyncpa [#allocation6], 1 }
  0x40   :  { %205 = vsyncpa [#allocation4], 1 }
  0x41   :  { %206 = vsyncpa [#allocation9], 1 }

</bundles_post_ra>
